<compile_context>
chip_gen: v7x
topology: tpu7x:2x2x1
jax: 0.10.0
libtpu: 0.0.40
codegen_flags: <defaults>
</compile_context>

<pallas_src>
import functools

import jax
import jax.numpy as jnp
from jax.experimental import pallas as pl
from jax.experimental.pallas import tpu as pltpu


# VMEM sizing: keep the double-buffered pipeline tiles within ~32 MiB and ask
# Mosaic for 48 MiB of scoped VMEM.  48 MiB fits every generation (v5e/v6e:
# 128 MiB physical, v7x: 64 MiB physical per TensorCore) while being well
# above the 16/32 MiB scoped defaults.
_TILE_VMEM_BUDGET = 32 * 1024 * 1024
_VMEM_LIMIT_BYTES = 48 * 1024 * 1024
_LANE_WIDTH = 128


def _attention_pool_kernel(sm_ref, x_ref, o_ref, *, depth, lanes):
    # sm_ref: (1, depth*lanes)    softmax(attention logits), lane-tiled, resident.
    # x_ref:  (blk, depth*lanes)  slab of feature rows; lane layout is
    #                             [d=0 chunk | d=1 chunk | ... ], each `lanes` wide.
    # o_ref:  (blk, lanes)        pooled output rows.
    # Depth reduction = unrolled loop of plain VPU FMAs over static lane slices;
    # multiply in the input dtype, accumulate in f32.
    acc = (x_ref[:, 0:lanes] * sm_ref[:, 0:lanes]).astype(jnp.float32)
    for d in range(1, depth):
        lo = d * lanes
        acc = acc + (x_ref[:, lo:lo + lanes] * sm_ref[:, lo:lo + lanes]).astype(jnp.float32)
    o_ref[...] = acc.astype(o_ref.dtype)


def _pick_fold(bc, hw, lane_target=_LANE_WIDTH):
    """Factor g of the batch*channel axis to fold into lanes so g*hw is lane-dense."""
    if hw >= lane_target:
        return 1
    divisors = [g for g in range(1, bc + 1) if bc % g == 0]
    for g in divisors:                      # prefer an exact multiple of 128 lanes
        if (g * hw) % lane_target == 0:
            return g
    for g in divisors:                      # else at least fill the lanes
        if g * hw >= lane_target:
            return g
    return bc                               # tiny tensor: fold everything


def _pick_block_rows(rows, depth, lanes, x_bytes, o_bytes):
    """Rows per grid step, sized so double-buffered tiles fit the VMEM budget."""
    if rows <= 8:
        return rows                          # block == full array dim (allowed)
    per_row = lanes * (2 * depth * x_bytes + 2 * o_bytes + 4)   # dbl-buf in/out + f32 acc
    blk = int(_TILE_VMEM_BUDGET // max(per_row, 1))
    blk = max(8, min(blk, 1024))
    # Keep at least two grid steps so the "parallel" BC axis can shard across
    # TensorCores (v7x has 2 TCs per chip).
    half = -(-rows // 2)
    half = -(-half // 8) * 8
    blk = min(blk, max(8, half))
    return max(8, (blk // 8) * 8)


def attention_pool(f, attn_weights):
    """Pallas AttentionPool.

    f:            (bs, C, D, H, W) feature map (torch: f.view(bs, -1, in_chans, H, W))
    attn_weights: (1, 1, D, H, W)  learnable logits; softmax taken over D
    returns:      (bs, C, H, W)    == sum_D softmax(w) * f
    """
    bs, C, D, H, W = f.shape
    HW = H * W
    BC = bs * C

    # Softmax hoisted out of the kernel: compute once in f32 on the tiny weights.
    sm = jax.nn.softmax(attn_weights.astype(jnp.float32).reshape(D, HW), axis=0)

    # Lane-dense layout: fold g rows of the BC axis into the lane dim.
    g = _pick_fold(BC, HW)
    rows = BC // g
    L = g * HW

    if g == 1:
        x2 = f.reshape(rows, D * L)                         # pure reshape, no copy
    else:
        # (rows, g, D, HW) -> (rows, D, g, HW): one small relayout pass, taken
        # only for the low-resolution scales where HW < 128.
        x2 = (f.reshape(rows, g, D, HW)
                .transpose(0, 2, 1, 3)
                .reshape(rows, D * L))
    # Tile softmax(w) across the folded lane groups; cast so the multiply runs
    # in the input dtype (bf16 stays bf16), accumulation is f32 in the kernel.
    sm_l = jnp.broadcast_to(sm[:, None, :], (D, g, HW)).reshape(1, D * L).astype(f.dtype)

    itemsize = jnp.dtype(f.dtype).itemsize
    blk = _pick_block_rows(rows, D, L, itemsize, itemsize)
    grid = (pl.cdiv(rows, blk),)             # partial edge block masked by Pallas

    kernel = functools.partial(_attention_pool_kernel, depth=D, lanes=L)
    out2 = pl.pallas_call(
        kernel,
        out_shape=jax.ShapeDtypeStruct((rows, L), f.dtype),
        grid_spec=pltpu.PrefetchScalarGridSpec(
            num_scalar_prefetch=0,
            grid=grid,
            in_specs=[
                pl.BlockSpec((1, D * L), lambda i: (0, 0)),     # softmax(w): resident
                pl.BlockSpec((blk, D * L), lambda i: (i, 0)),   # feature slab
            ],
            out_specs=pl.BlockSpec((blk, L), lambda i: (i, 0)),
        ),
        compiler_params=pltpu.CompilerParams(
            dimension_semantics=("parallel",),
            vmem_limit_bytes=_VMEM_LIMIT_BYTES,
        ),
    )(sm_l, x2)

    # Un-fold: pure reshape (the fold kept g adjacent to HW in lane order).
    return out2.reshape(bs, C, H, W)


def attention_pool_ref(f, attn_weights):
    """Pure-JAX reference matching the PyTorch AttentionPool.forward exactly."""
    sm = jax.nn.softmax(attn_weights.astype(jnp.float32), axis=2)
    return jnp.sum(sm * f.astype(jnp.float32), axis=2).astype(f.dtype)


def custom_model_forward_pool_path(x, feat_maps, pool_weights, in_chans):
    """The cfg.use_pool branch of CustomModel.forward, with external pieces stubbed.

    x:            (bs, in_chans, size, size)  raw input (used for bs / skip connection)
    feat_maps:    list of (bs*in_chans, C_i, H_i, W_i)  -- synthetic stand-ins for the
                  timm encoder outputs on x.view(-1, 1, size, size)
    pool_weights: list of (1, 1, in_chans, H_i, W_i) attention logits, one per scale
    """
    bs = x.shape[0]
    # TODO(synk): timm encoder (self.encoder / get_features) is an external pretrained
    # backbone; synthetic feature maps are passed in instead of running it here.
    pooled = []
    # Note: one pallas_call per scale; the smallest scales are a few KiB so the
    # launch cost dominates there, but they are kept on the kernel path so the
    # Pallas implementation is exercised for every pooler in the module.
    for f, w in zip(feat_maps, pool_weights):
        f5 = f.reshape(bs, -1, in_chans, f.shape[-2], f.shape[-1])
        pooled.append(attention_pool(f5, w))
    feat_maps_pooled = [x] + pooled
    # TODO(synk): smp UnetDecoder / SegmentationHead / optional denoiser are external
    # pretrained modules with no in-script definition; they are not reimplemented.
    return feat_maps_pooled


if __name__ == "__main__":
    key = jax.random.PRNGKey(0)
    bs, in_chans, size = 2, 4, 16          # x: (2, 4, 16, 16)
    k_x, key = jax.random.split(key)
    x = jax.random.normal(k_x, (bs, in_chans, size, size), dtype=jnp.float32)

    # Synthetic encoder feature maps at 3 scales (channels grow, spatial shrinks),
    # shaped like encoder(x.view(-1, 1, size, size)) outputs: (bs*in_chans, C_i, H_i, W_i).
    scales = [(8, 8), (16, 4), (32, 2)]    # (channels, spatial)
    feat_maps, pool_weights = [], []
    for C_i, s_i in scales:
        k_f, k_w, key = jax.random.split(key, 3)
        feat_maps.append(
            jax.random.normal(k_f, (bs * in_chans, C_i, s_i, s_i), dtype=jnp.float32))
        # torch init is nn.Parameter(torch.ones(1,1,D,H,W)); a deterministic random
        # init is used here so the softmax path is exercised non-trivially.
        pool_weights.append(
            jax.random.normal(k_w, (1, 1, in_chans, s_i, s_i), dtype=jnp.float32))

    outs = custom_model_forward_pool_path(x, feat_maps, pool_weights, in_chans)
    outs = [jax.block_until_ready(o) for o in outs]

    # Verify the Pallas AttentionPool against the pure-JAX reference.
    ok = True
    for f, w, o in zip(feat_maps, pool_weights, outs[1:]):
        f5 = f.reshape(bs, -1, in_chans, f.shape[-2], f.shape[-1])
        ref = attention_pool_ref(f5, w)
        ok &= bool(jnp.allclose(o, ref, atol=1e-5, rtol=1e-5))
        assert o.shape == (bs, f5.shape[1], f.shape[-2], f.shape[-1])

    if ok:
        print("KERNEL_OK")
    else:
        print("KERNEL_MISMATCH")
</pallas_src>

<mosaic_0001>
module attributes {stable_mosaic.version = 11 : i64} {
  func.func @_attention_pool_kernel(%arg0: i32, %arg1: memref<1x512xf32, #tpu.memory_space<vmem>>, %arg2: memref<8x512xf32, #tpu.memory_space<vmem>>, %arg3: memref<8x128xf32, #tpu.memory_space<vmem>>) attributes {dimension_semantics = [#tpu.dimension_semantics<parallel>], iteration_bounds = array<i64: 1>, scalar_prefetch = 0 : i64, scratch_operands = 0 : i64, tpu.core_type = #tpu.core_type<tc>, window_params = [{pipeline_mode = #tpu.pipeline_mode<synchronous>, transform_indices = @transform_0, window_bounds = array<i64: 1, 512>}, {transform_indices = @transform_1, window_bounds = array<i64: 8, 512>}, {transform_indices = @transform_2, window_bounds = array<i64: 8, 128>}]} {
    %c0 = arith.constant 0 : index
    %c0_0 = arith.constant 0 : index
    %0 = vector.load %arg2[%c0, %c0_0] : memref<8x512xf32, #tpu.memory_space<vmem>>, vector<8x128xf32>
    %c0_1 = arith.constant 0 : index
    %c0_2 = arith.constant 0 : index
    %1 = vector.load %arg1[%c0_1, %c0_2] : memref<1x512xf32, #tpu.memory_space<vmem>>, vector<1x128xf32>
    %2 = vector.broadcast %1 : vector<1x128xf32> to vector<8x128xf32>
    %3 = arith.mulf %0, %2 : vector<8x128xf32>
    %c0_3 = arith.constant 0 : index
    %c128 = arith.constant 128 : index
    %4 = vector.load %arg2[%c0_3, %c128] : memref<8x512xf32, #tpu.memory_space<vmem>>, vector<8x128xf32>
    %c0_4 = arith.constant 0 : index
    %c128_5 = arith.constant 128 : index
    %5 = vector.load %arg1[%c0_4, %c128_5] : memref<1x512xf32, #tpu.memory_space<vmem>>, vector<1x128xf32>
    %6 = vector.broadcast %5 : vector<1x128xf32> to vector<8x128xf32>
    %7 = arith.mulf %4, %6 : vector<8x128xf32>
    %8 = arith.addf %3, %7 : vector<8x128xf32>
    %c0_6 = arith.constant 0 : index
    %c256 = arith.constant 256 : index
    %9 = vector.load %arg2[%c0_6, %c256] : memref<8x512xf32, #tpu.memory_space<vmem>>, vector<8x128xf32>
    %c0_7 = arith.constant 0 : index
    %c256_8 = arith.constant 256 : index
    %10 = vector.load %arg1[%c0_7, %c256_8] : memref<1x512xf32, #tpu.memory_space<vmem>>, vector<1x128xf32>
    %11 = vector.broadcast %10 : vector<1x128xf32> to vector<8x128xf32>
    %12 = arith.mulf %9, %11 : vector<8x128xf32>
    %13 = arith.addf %8, %12 : vector<8x128xf32>
    %c0_9 = arith.constant 0 : index
    %c384 = arith.constant 384 : index
    %14 = vector.load %arg2[%c0_9, %c384] : memref<8x512xf32, #tpu.memory_space<vmem>>, vector<8x128xf32>
    %c0_10 = arith.constant 0 : index
    %c384_11 = arith.constant 384 : index
    %15 = vector.load %arg1[%c0_10, %c384_11] : memref<1x512xf32, #tpu.memory_space<vmem>>, vector<1x128xf32>
    %16 = vector.broadcast %15 : vector<1x128xf32> to vector<8x128xf32>
    %17 = arith.mulf %14, %16 : vector<8x128xf32>
    %18 = arith.addf %13, %17 : vector<8x128xf32>
    %c0_12 = arith.constant 0 : index
    %c0_13 = arith.constant 0 : index
    %19 = vector.load %arg3[%c0_12, %c0_13] : memref<8x128xf32, #tpu.memory_space<vmem>>, vector<8x128xf32>
    tpu.vector_store %arg3[%c0_12, %c0_13], %18 {strides = array<i32>} : memref<8x128xf32, #tpu.memory_space<vmem>>, vector<8x128xf32>,
    return
  }
  func.func @transform_0(%arg0: i32) -> (i32, i32) {
    %c0_i32 = arith.constant 0 : i32
    %c0_i32_0 = arith.constant 0 : i32
    %c0_i32_1 = arith.constant 0 : i32
    return %c0_i32, %c0_i32_0 : i32, i32
  }
  func.func @transform_1(%arg0: i32) -> (i32, i32) {
    %c0_i32 = arith.constant 0 : i32
    %c0_i32_0 = arith.constant 0 : i32
    return %arg0, %c0_i32 : i32, i32
  }
  func.func @transform_2(%arg0: i32) -> (i32, i32) {
    %c0_i32 = arith.constant 0 : i32
    %c0_i32_0 = arith.constant 0 : i32
    return %arg0, %c0_i32 : i32, i32
  }
}

</mosaic_0001>

<bundles_post_ra>
// kernel: tpu_custom_call.1
= control target key start
LH: loop header
LB: loop body
LE: loop exit
PB: predicated region body
PF: predicated region fallthrough
CT: control target
= control target key end

     0   :  { %7 = vsyncpa [#allocation3], 0  ;;  %s225_s0 = inlined_call_operand.hbm [shape: f32[1,512], index: 0, kind: input, shape index: {}]   ;;  %s226_s1 = inlined_call_operand.hbm [shape: f32[8,512], index: 1, kind: input, shape index: {}]   ;;  %s227_s2 = inlined_call_operand.hbm [shape: f32[8,128], index: 2, kind: output, shape index: {}]  }
   0x1   :  { %8 = vsyncpa [#allocation6], 0 }
   0x2   :  { %9 = vsyncpa [#allocation4], 0  ;;  %s171_s9 = smov [#allocation2]   ;;  %s172_s11 = smov [#allocation5]  }
   0x3   :  { %s16_s10 = sshll.u32 %s171_s9, 4  ;;  %s26_s12 = sshll.u32 %s172_s11, 4  ;;  %s17_s10 = int_to_ptr.vmem [resolvable:$true] %s16_s10  ;;  %s27_s12 = int_to_ptr.vmem [resolvable:$true] %s26_s12 }
   0x4   :  { %s99_s15 = scalar_lea.hbm %s225_s0, 64 }
   0x5   :  { %p100_p0 = scmp.ne.s32.totalorder %s225_s0, %s99_s15  ;;  %p103_p1 = scmp.lt.u32.totalorder %s99_s15, %s225_s0 }
   0x7   :  { %p105_p2 = pnand %p103_p1, %p100_p0 }
   0x9   :  { %108 = shalt.err (!%p105_p2)
}
   0xa   :  { %s109_s20 = scalar_lea.vmem %s17_s10, 64  ;;  %p114_p4 = scmp.lt.s32.totalorder %s17_s10, %s17_s10 }
   0xb   :  { %p110_p3 = scmp.ne.s32.totalorder %s17_s10, %s109_s20  ;;  %p115_p5 = scmp.lt.s32.totalorder %s109_s20, %s109_s20 }
   0xd   :  { %p116_p6 = por %p115_p5, %p114_p4 }
   0xf   :  { %p117_p7 = pnand %p116_p6, %p110_p3 }
  0x11   :  { %120 = shalt.err (!%p117_p7)
}
  0x12   :  { %19 = dma.hbm_to_vmem [thread:$0]  %s225_s0, 64, %s17_s10, [#allocation3]  }
  0x13   :  { %s121_s25 = scalar_lea.hbm %s226_s1, 512 }
  0x14   :  { %p122_p8 = scmp.ne.s32.totalorder %s226_s1, %s121_s25  ;;  %p125_p9 = scmp.lt.u32.totalorder %s121_s25, %s226_s1 }
  0x16   :  { %p127_p10 = pnand %p125_p9, %p122_p8 }
  0x18   :  { %130 = shalt.err (!%p127_p10)
}
  0x19   :  { %s131_s30 = scalar_lea.vmem %s27_s12, 512  ;;  %p136_p12 = scmp.lt.s32.totalorder %s27_s12, %s27_s12 }
  0x1a   :  { %p132_p11 = scmp.ne.s32.totalorder %s27_s12, %s131_s30  ;;  %p137_p13 = scmp.lt.s32.totalorder %s131_s30, %s131_s30 }
  0x1c   :  { %p138_p0 = por %p137_p13, %p136_p12 }
  0x1e   :  { %p139_p1 = pnand %p138_p0, %p132_p11 }
  0x20   :  { %142 = shalt.err (!%p139_p1)
}
  0x21   :  { %29 = dma.hbm_to_vmem [thread:$0]  %s226_s1, 512, %s27_s12, [#allocation6]  }
  0x22   :  { %165 = dma.done.wait [#allocation3], 64  }
  0x23   :  { %166 = vsyncadd [#allocation3], 4294967232 }
  0x24   :  { %167 = dma.done.wait [#allocation6], 512  }
  0x25   :  { %168 = vsyncadd [#allocation6], 4294966784  ;;  %v36_v0 = vld [vmem:[#allocation5] sm:$0xff]  ;;  %v92_v1 = vld [vmem:[#allocation2] ss:$0 sm:$0xff]  ;;  %s173_s4 = smov [#allocation7]  }
  0x26   :  { %v45_v2 = vld [vmem:[#allocation5 + $0x8] sm:$0xff]  ;;  %v44_v3 = vmul.f32 %v92_v1, %v36_v0  ;;  %v93_v4 = vld [vmem:[#allocation2 + $0x1] ss:$0 sm:$0xff]  ;;  %v55_v5 = vld [vmem:[#allocation5 + $0x10] sm:$0xff]  ;;  %s82_s5 = sshll.u32 %s173_s4, 4  ;;  %s83_s5 = int_to_ptr.vmem [resolvable:$true] %s82_s5 }
  0x27   :  { %v94_v6 = vld [vmem:[#allocation2 + $0x2] ss:$0 sm:$0xff]  ;;  %v53_v7 = vmul.f32 %v93_v4, %v45_v2  ;;  %v95_v10 = vld [vmem:[#allocation2 + $0x3] ss:$0 sm:$0xff]  ;;  %s143_s1 = scalar_lea.vmem %s83_s5, 128  ;;  %p148_p3 = scmp.lt.s32.totalorder %s83_s5, %s83_s5 }
  0x28   :  { %v63_v8 = vmul.f32 %v94_v6, %v55_v5  ;;  %v65_v9 = vld [vmem:[#allocation5 + $0x18] sm:$0xff]  ;;  %p144_p2 = scmp.ne.s32.totalorder %s83_s5, %s143_s1  ;;  %p149_p4 = scmp.lt.s32.totalorder %s143_s1, %s143_s1 }
  0x29   :  { %v54_v11 = vadd.f32 %v53_v7, %v44_v3  ;;  %v73_v12 = vmul.f32 %v95_v10, %v65_v9 }
  0x2a   :  { %p150_p5 = por %p149_p4, %p148_p3 }
  0x2b   :  { %v64_v13 = vadd.f32 %v63_v8, %v54_v11 }
  0x2c   :  { %p151_p6 = pnand %p150_p5, %p144_p2 }
  0x2d   :  { %v74_v14 = vadd.f32 %v73_v12, %v64_v13 }
  0x2f   :  { %75 = vst [vmem:[#allocation7] sm:$0xff] %v74_v14 }
  0x30   :  { %154 = shalt.err (!%p151_p6)
}
  0x31   :  { %s155_s8 = scalar_lea.hbm %s227_s2, 128 }
  0x32   :  { %p156_p7 = scmp.ne.s32.totalorder %s227_s2, %s155_s8  ;;  %p159_p8 = scmp.lt.u32.totalorder %s155_s8, %s227_s2 }
  0x34   :  { %p161_p9 = pnand %p159_p8, %p156_p7 }
  0x36   :  { %164 = shalt.err (!%p161_p9)
}
  0x37   :  { %85 = dma.vmem_to_hbm [thread:$0]  %s83_s5, 128, %s227_s2, [#allocation4]  }
  0x38   :  { %169 = dma.done.wait [#allocation4], 128  }
  0x39   :  { %170 = vsyncadd [#allocation4], 4294967168 }
  0x3a   :  { %89 = vsyncpa [#allocation3], 1 }
  0x3b   :  { %90 = vsyncpa [#allocation6], 1 }
  0x3c   :  { %91 = vsyncpa [#allocation4], 1 }

</bundles_post_ra>
